<compile_context>
chip_gen: v7x
topology: tpu7x:2x2x1
jax: 0.10.0
libtpu: 0.0.40
codegen_flags: <defaults>
</compile_context>

<pallas_src>
import functools

import jax
import jax.numpy as jnp
from jax.experimental import pallas as pl
from jax.experimental.pallas import tpu as pltpu


def _ln_tanh_epilogue(y, p_ref, o_ref, eps):
    """y: (Bt, N) f32 matmul result.  p_ref: (3, N) f32 = [bias; gamma; beta]."""
    y = y + p_ref[0:1, :]
    # var = E[y^2] - E[y]^2 keeps fewer f32 temporaries live at Bt=256.
    mean = jnp.mean(y, axis=-1, keepdims=True)
    mean_sq = jnp.mean(y * y, axis=-1, keepdims=True)
    var = jnp.maximum(mean_sq - mean * mean, 0.0)
    y = (y - mean) * jax.lax.rsqrt(var + eps)
    o_ref[...] = jnp.tanh(y * p_ref[1:2, :] + p_ref[2:3, :]).astype(o_ref.dtype)


def _proj_kernel_fused(x_ref, w_ref, p_ref, o_ref, *, eps):
    """Full-K path: bf16 matmul (f32 acc) + fused LayerNorm + tanh, no scratch."""
    y = jnp.dot(x_ref[...], w_ref[...], preferred_element_type=jnp.float32)
    _ln_tanh_epilogue(y, p_ref, o_ref, eps)


def _proj_kernel_ktiled(x_ref, w_ref, p_ref, o_ref, acc_ref, *, eps):
    """K-tiled path: f32 VMEM accumulator; epilogue on the last k step."""
    k = pl.program_id(1)

    @pl.when(k == 0)
    def _():
        acc_ref[...] = jnp.zeros_like(acc_ref)

    acc_ref[...] += jnp.dot(x_ref[...], w_ref[...],
                            preferred_element_type=jnp.float32)

    @pl.when(k == pl.num_programs(1) - 1)
    def _():
        _ln_tanh_epilogue(acc_ref[...], p_ref, o_ref, eps)


def encoder_forward(x, w, b, gamma, beta, *, detach=False, eps=1e-5,
                    batch_block=None, k_block=None,
                    compute_dtype=jnp.bfloat16):
    """Encoder forward: free flatten -> fused Linear + LayerNorm + Tanh."""
    B = x.shape[0]
    # Flatten == torch .view(B, -1): pure metadata change, done in the wrapper.
    feats = x.reshape(B, -1)
    if detach:
        feats = jax.lax.stop_gradient(feats)   # torch .detach()
    K = feats.shape[1]
    N = w.shape[1]
    out_dtype = x.dtype

    # bf16 matmul operands (half the HBM bytes, MXU fast path); f32 everywhere else.
    feats_c = feats.astype(compute_dtype)
    w_c = w.astype(compute_dtype)
    c_item = jnp.dtype(compute_dtype).itemsize
    o_item = jnp.dtype(out_dtype).itemsize

    # Pack bias/gamma/beta into one (3, N) f32 slab -> single DMA instead of 3.
    params = jnp.stack([b, gamma, beta], axis=0).astype(jnp.float32)

    # ---- VMEM budget (per-chip) -------------------------------------------
    try:
        phys_vmem = pltpu.get_tpu_info().vmem_capacity_bytes
    except Exception:
        phys_vmem = 64 * 1024 * 1024            # conservative (v7x per-TC size)
    vmem_limit = int(min(phys_vmem * 3 // 4, 100 * 1024 * 1024))
    budget = int(vmem_limit * 0.8)

    # ---- batch tile ---------------------------------------------------------
    if batch_block is None:
        if B <= 8:
            batch_block = B
        else:
            batch_block = min(256, (B // 8) * 8)
            if B >= 16:
                # keep >= 2 programs on the parallel batch axis (v7x: 2 cores)
                half = ((B + 1) // 2 + 7) // 8 * 8
                batch_block = min(batch_block, max(8, half))
    bb = batch_block

    def _ws_bytes(kb, ktiled):
        act = 2 * bb * kb * c_item                      # double-buffered activations
        wgt = 2 * kb * N * c_item                       # weight (default double-buffer)
        acc = bb * N * 4 if ktiled else 0               # f32 accumulator scratch
        out = 2 * bb * N * o_item                       # double-buffered output
        par = 3 * N * 4                                 # packed params
        return act + wgt + acc + out + par

    # ---- K tile (only when the full-K working set would not fit VMEM) ------
    if k_block is None:
        if _ws_bytes(K, False) <= budget:
            k_block = K
        else:
            k_block = K
            for kb in (8192, 4096, 2048, 1024, 512, 256, 128):
                if K % kb == 0 and _ws_bytes(kb, True) <= budget:
                    k_block = kb
                    break
    k_tiled = k_block < K

    cost = pl.CostEstimate(
        flops=2 * B * K * N,
        transcendentals=B * N + B,                      # tanh + rsqrt
        bytes_accessed=(B * K + K * N) * c_item + B * N * o_item + 3 * N * 4,
    )

    if not k_tiled:
        grid = (pl.cdiv(B, bb),)
        in_specs = [
            pl.BlockSpec((bb, K), lambda i: (i, 0)),       # fused flatten
            pl.BlockSpec((K, N), lambda i: (0, 0)),        # VMEM-resident weight
            pl.BlockSpec((3, N), lambda i: (0, 0)),        # packed bias/gamma/beta
        ]
        out_specs = pl.BlockSpec((bb, N), lambda i: (i, 0))
        scratch_shapes = []
        kernel = functools.partial(_proj_kernel_fused, eps=eps)
        dims = ("parallel",)
    else:
        assert K % k_block == 0, (K, k_block)
        grid = (pl.cdiv(B, bb), K // k_block)              # reduction axis last
        in_specs = [
            pl.BlockSpec((bb, k_block), lambda i, k: (i, k)),
            pl.BlockSpec((k_block, N), lambda i, k: (k, 0)),
            pl.BlockSpec((3, N), lambda i, k: (0, 0)),
        ]
        out_specs = pl.BlockSpec((bb, N), lambda i, k: (i, 0))
        scratch_shapes = [pltpu.VMEM((bb, N), jnp.float32)]
        kernel = functools.partial(_proj_kernel_ktiled, eps=eps)
        dims = ("parallel", "arbitrary")

    return pl.pallas_call(
        kernel,
        out_shape=jax.ShapeDtypeStruct((B, N), out_dtype),
        grid=grid,
        in_specs=in_specs,
        out_specs=out_specs,
        scratch_shapes=scratch_shapes,
        compiler_params=pltpu.CompilerParams(
            dimension_semantics=dims,
            vmem_limit_bytes=vmem_limit,
        ),
        cost_estimate=cost,
    )(feats_c, w_c, params)


if __name__ == "__main__":
    key = jax.random.PRNGKey(0)
    kx, kw, kb, kg, kbt = jax.random.split(key, 5)

    # Small conv-feature-map shaped input (output of shared_cnn/head_cnn convs).
    B, C, H, W = 2, 4, 16, 16
    K = C * H * W                 # 1024: lane-dense (multiple of 128)
    N = 128                       # projection.out_dim, lane-dense

    x = jax.random.normal(kx, (B, C, H, W), dtype=jnp.float32)
    w = jax.random.normal(kw, (K, N), dtype=jnp.float32) / (K ** 0.5)
    b = 0.1 * jax.random.normal(kb, (N,), dtype=jnp.float32)
    gamma = 1.0 + 0.1 * jax.random.normal(kg, (N,), dtype=jnp.float32)
    beta = 0.1 * jax.random.normal(kbt, (N,), dtype=jnp.float32)

    # Pure-JAX f32 reference: flatten -> Linear -> LayerNorm -> Tanh.
    f = x.reshape(B, -1)
    y = f @ w + b
    mu = y.mean(-1, keepdims=True)
    var = ((y - mu) ** 2).mean(-1, keepdims=True)
    ref = jnp.tanh(((y - mu) / jnp.sqrt(var + 1e-5)) * gamma + beta)

    # Path 1: full-K, VMEM-resident weight, fused epilogue.
    out = encoder_forward(x, w, b, gamma, beta, detach=True)
    out = jax.block_until_ready(out)
    assert out.shape == (B, N), out.shape
    assert out.dtype == x.dtype
    err = float(jnp.max(jnp.abs(out - ref)))
    assert err < 5e-2, err        # bf16 operands -> loosened tolerance

    # Path 2: K-tiled accumulation (selected automatically when the full-K
    # working set would exceed the VMEM budget, e.g. huge K on v7x's 64 MiB).
    out_kt = encoder_forward(x, w, b, gamma, beta, detach=True, k_block=256)
    out_kt = jax.block_until_ready(out_kt)
    err_kt = float(jnp.max(jnp.abs(out_kt - ref)))
    assert err_kt < 5e-2, err_kt

    print("KERNEL_OK")
</pallas_src>

<mosaic_0001>
module attributes {stable_mosaic.version = 11 : i64} {
  func.func @_proj_kernel_fused(%arg0: i32, %arg1: memref<2x1024xbf16, #tpu.memory_space<vmem>>, %arg2: memref<1024x128xbf16, #tpu.memory_space<vmem>>, %arg3: memref<3x128xf32, #tpu.memory_space<vmem>>, %arg4: memref<2x128xf32, #tpu.memory_space<vmem>>) attributes {dimension_semantics = [#tpu.dimension_semantics<parallel>], iteration_bounds = array<i64: 1>, scalar_prefetch = 0 : i64, scratch_operands = 0 : i64, tpu.core_type = #tpu.core_type<tc>, window_params = [{transform_indices = @transform_0, window_bounds = array<i64: 2, 1024>}, {pipeline_mode = #tpu.pipeline_mode<synchronous>, transform_indices = @transform_1, window_bounds = array<i64: 1024, 128>}, {pipeline_mode = #tpu.pipeline_mode<synchronous>, transform_indices = @transform_2, window_bounds = array<i64: 3, 128>}, {transform_indices = @transform_3, window_bounds = array<i64: 2, 128>}]} {
    %c0 = arith.constant 0 : index
    %c0_0 = arith.constant 0 : index
    %0 = vector.load %arg1[%c0, %c0_0] : memref<2x1024xbf16, #tpu.memory_space<vmem>>, vector<2x1024xbf16>
    %c0_1 = arith.constant 0 : index
    %c0_2 = arith.constant 0 : index
    %1 = vector.load %arg2[%c0_1, %c0_2] : memref<1024x128xbf16, #tpu.memory_space<vmem>>, vector<1024x128xbf16>
    %cst = arith.constant dense<0.000000e+00> : vector<2x128xf32>
    %2 = tpu.matmul %0, %1, %cst {dimension_numbers = #tpu.dot_dimension_numbers<[1], [0], [0], [1], [0, 0, 1, 1], [], []>} : vector<2x1024xbf16>, vector<1024x128xbf16>, vector<2x128xf32> -> vector<2x128xf32>
    %c0_3 = arith.constant 0 : index
    %c0_4 = arith.constant 0 : index
    %3 = vector.load %arg3[%c0_3, %c0_4] : memref<3x128xf32, #tpu.memory_space<vmem>>, vector<1x128xf32>
    %4 = vector.broadcast %3 : vector<1x128xf32> to vector<2x128xf32>
    %5 = arith.addf %2, %4 : vector<2x128xf32>
    %cst_5 = arith.constant dense<0.000000e+00> : vector<2xf32>
    %6 = vector.multi_reduction <add>, %5, %cst_5 [1] : vector<2x128xf32> to vector<2xf32>
    %7 = vector.shape_cast %6 : vector<2xf32> to vector<2x1xf32>
    %cst_6 = arith.constant 1.280000e+02 : f32
    %8 = vector.broadcast %cst_6 : f32 to vector<2x1xf32>
    %9 = arith.divf %7, %8 : vector<2x1xf32>
    %10 = arith.mulf %5, %5 : vector<2x128xf32>
    %cst_7 = arith.constant dense<0.000000e+00> : vector<2xf32>
    %11 = vector.multi_reduction <add>, %10, %cst_7 [1] : vector<2x128xf32> to vector<2xf32>
    %12 = vector.shape_cast %11 : vector<2xf32> to vector<2x1xf32>
    %cst_8 = arith.constant 1.280000e+02 : f32
    %13 = vector.broadcast %cst_8 : f32 to vector<2x1xf32>
    %14 = arith.divf %12, %13 : vector<2x1xf32>
    %15 = arith.mulf %9, %9 : vector<2x1xf32>
    %16 = arith.subf %14, %15 : vector<2x1xf32>
    %cst_9 = arith.constant 0.000000e+00 : f32
    %17 = vector.broadcast %cst_9 : f32 to vector<2x1xf32>
    %18 = arith.maximumf %16, %17 : vector<2x1xf32>
    %19 = vector.broadcast %9 : vector<2x1xf32> to vector<2x128xf32>
    %20 = arith.subf %5, %19 : vector<2x128xf32>
    %cst_10 = arith.constant 9.99999974E-6 : f32
    %21 = vector.broadcast %cst_10 : f32 to vector<2x1xf32>
    %22 = arith.addf %18, %21 : vector<2x1xf32>
    %23 = math.rsqrt %22 : vector<2x1xf32>
    %24 = vector.broadcast %23 : vector<2x1xf32> to vector<2x128xf32>
    %25 = arith.mulf %20, %24 : vector<2x128xf32>
    %c1 = arith.constant 1 : index
    %c0_11 = arith.constant 0 : index
    %26 = vector.load %arg3[%c1, %c0_11] : memref<3x128xf32, #tpu.memory_space<vmem>>, vector<1x128xf32>
    %27 = vector.broadcast %26 : vector<1x128xf32> to vector<2x128xf32>
    %28 = arith.mulf %25, %27 : vector<2x128xf32>
    %c2 = arith.constant 2 : index
    %c0_12 = arith.constant 0 : index
    %29 = vector.load %arg3[%c2, %c0_12] : memref<3x128xf32, #tpu.memory_space<vmem>>, vector<1x128xf32>
    %30 = vector.broadcast %29 : vector<1x128xf32> to vector<2x128xf32>
    %31 = arith.addf %28, %30 : vector<2x128xf32>
    %32 = math.tanh %31 : vector<2x128xf32>
    %c0_13 = arith.constant 0 : index
    %c0_14 = arith.constant 0 : index
    %33 = vector.load %arg4[%c0_13, %c0_14] : memref<2x128xf32, #tpu.memory_space<vmem>>, vector<2x128xf32>
    tpu.vector_store %arg4[%c0_13, %c0_14], %32 {strides = array<i32>} : memref<2x128xf32, #tpu.memory_space<vmem>>, vector<2x128xf32>,
    return
  }
  func.func @transform_0(%arg0: i32) -> (i32, i32) {
    %c0_i32 = arith.constant 0 : i32
    %c0_i32_0 = arith.constant 0 : i32
    return %arg0, %c0_i32 : i32, i32
  }
  func.func @transform_1(%arg0: i32) -> (i32, i32) {
    %c0_i32 = arith.constant 0 : i32
    %c0_i32_0 = arith.constant 0 : i32
    %c0_i32_1 = arith.constant 0 : i32
    return %c0_i32, %c0_i32_0 : i32, i32
  }
  func.func @transform_2(%arg0: i32) -> (i32, i32) {
    %c0_i32 = arith.constant 0 : i32
    %c0_i32_0 = arith.constant 0 : i32
    %c0_i32_1 = arith.constant 0 : i32
    return %c0_i32, %c0_i32_0 : i32, i32
  }
  func.func @transform_3(%arg0: i32) -> (i32, i32) {
    %c0_i32 = arith.constant 0 : i32
    %c0_i32_0 = arith.constant 0 : i32
    return %arg0, %c0_i32 : i32, i32
  }
}

</mosaic_0001>

<bundles_post_ra>
// kernel: tpu_custom_call.1
= control target key start
LH: loop header
LB: loop body
LE: loop exit
PB: predicated region body
PF: predicated region fallthrough
CT: control target
= control target key end

     0   :  { %8 = vsyncpa [#allocation3], 0  ;;  %s1219_s0 = inlined_call_operand.hbm [shape: bf16[2,1024], index: 0, kind: input, shape index: {}]   ;;  %s1220_s1 = inlined_call_operand.hbm [shape: bf16[1024,128], index: 1, kind: input, shape index: {}]   ;;  %s1221_s2 = inlined_call_operand.vmem [shape: f32[3,128], index: 2, kind: input, shape index: {}]   ;;  %s1222_s3 = inlined_call_operand.hbm [shape: f32[2,128], index: 3, kind: output, shape index: {}]  }
   0x1   :  { %9 = vsyncpa [#allocation6], 0 }
   0x2   :  { %10 = vsyncpa [#allocation4], 0  ;;  %s1128_s12 = smov [#allocation2]   ;;  %s1129_s14 = smov [#allocation5]  }
   0x3   :  { %s17_s13 = sshll.u32 %s1128_s12, 4  ;;  %s26_s15 = sshll.u32 %s1129_s14, 4  ;;  %s18_s13 = int_to_ptr.vmem [resolvable:$true] %s17_s13  ;;  %s1154_s15 = int_to_ptr.vmem [resolvable:$true] %s26_s15 }
   0x4   :  { %s1056_s18 = scalar_lea.hbm %s1219_s0, 128 }
   0x5   :  { %p1057_p0 = scmp.ne.s32.totalorder %s1219_s0, %s1056_s18  ;;  %p1060_p1 = scmp.lt.u32.totalorder %s1056_s18, %s1219_s0 }
   0x7   :  { %p1062_p2 = pnand %p1060_p1, %p1057_p0 }
   0x9   :  { %1065 = shalt.err (!%p1062_p2)
}
   0xa   :  { %s1066_s23 = scalar_lea.vmem %s18_s13, 128  ;;  %p1071_p4 = scmp.lt.s32.totalorder %s18_s13, %s18_s13 }
   0xb   :  { %p1067_p3 = scmp.ne.s32.totalorder %s18_s13, %s1066_s23  ;;  %p1072_p5 = scmp.lt.s32.totalorder %s1066_s23, %s1066_s23 }
   0xd   :  { %p1073_p6 = por %p1072_p5, %p1071_p4 }
   0xf   :  { %p1074_p7 = pnand %p1073_p6, %p1067_p3 }
  0x11   :  { %1077 = shalt.err (!%p1074_p7)
}
  0x12   :  { %20 = dma.hbm_to_vmem [thread:$0]  %s1219_s0, 128, %s18_s13, [#allocation3]  }
  0x13   :  { %s1078_s28 = scalar_lea.hbm %s1220_s1, 8192 }
  0x14   :  { %p1079_p8 = scmp.ne.s32.totalorder %s1220_s1, %s1078_s28  ;;  %p1082_p9 = scmp.lt.u32.totalorder %s1078_s28, %s1220_s1 }
  0x16   :  { %p1084_p10 = pnand %p1082_p9, %p1079_p8 }
  0x18   :  { %1087 = shalt.err (!%p1084_p10)
}
  0x19   :  { %s1088_s6 = scalar_lea.vmem %s1154_s15, 8192  ;;  %p1093_p12 = scmp.lt.s32.totalorder %s1154_s15, %s1154_s15 }
  0x1a   :  { %p1089_p11 = scmp.ne.s32.totalorder %s1154_s15, %s1088_s6  ;;  %p1094_p13 = scmp.lt.s32.totalorder %s1088_s6, %s1088_s6 }
  0x1c   :  { %p1095_p0 = por %p1094_p13, %p1093_p12 }
  0x1e   :  { %p1096_p1 = pnand %p1095_p0, %p1089_p11 }
  0x20   :  { %1099 = shalt.err (!%p1096_p1)
}
  0x21   :  { %s1130_s0 = smov 64   ;;  %s1131_s7 = smov 4  }
  0x22   :  { %32 = dma.hbm_to_vmem [thread:$0]  %s1220_s1, 8192, %s1154_s15, [#allocation6], %s1130_s0, %s1130_s0, %s1131_s7  }
  0x23   :  { %1122 = dma.done.wait [#allocation3], 128  }
  0x24   :  { %1123 = vsyncadd [#allocation3], 4294967168 }
  0x25   :  { %1124 = dma.done.wait [#allocation6], 8192  }
  0x26   :  { %1125 = vsyncadd [#allocation6], 4294959104  ;;  %v987_v0 = vld [vmem:[#allocation5 + $0x40] sm:$0xff]   ;;  %v991_v4 = vld [vmem:[#allocation5 + $0x48] sm:$0xff]   ;;  %v1132_v22 = vmov 1966171168   ;;  %v181_v24 = vlaneseq }
  0x27   :  { %v988_v1 = vld [vmem:[#allocation5 + $0xc0] sm:$0xff]   ;;  %893 = vmatprep.subr.bf16.mxu0 %v987_v0  ;;  %v992_v5 = vld [vmem:[#allocation5 + $0xc8] sm:$0xff]   ;;  %v995_v8 = vld [vmem:[#allocation5 + $0x50] sm:$0xff]   ;;  %v179_v23 = vunpack.c.l.s4 %v1132_v22  ;;  %vm778_vm0 = vcmask 1041408   ;;  %s1133_s15 = smov [#allocation7]  }
  0x28   :  { %v989_v2 = vld [vmem:[#allocation5] sm:$0xff]   ;;  %915 = vmatprep.subr.bf16.mxu1 %v988_v1  ;;  %v993_v6 = vld [vmem:[#allocation5 + $0x8] sm:$0xff]   ;;  %v996_v9 = vld [vmem:[#allocation5 + $0xd0] sm:$0xff]   ;;  %v182_v30 = vshrl.u32 %v181_v24, 7  ;;  %s816_s16 = sshll.u32 %s1133_s15, 4  ;;  %s817_s16 = int_to_ptr.vmem [resolvable:$true] %s816_s16 }
  0x29   :  { %v990_v3 = vld [vmem:[#allocation5 + $0x80] sm:$0xff]   ;;  %894 = vmatpush3.bf16.msra.mxu0 %v989_v2  ;;  %v994_v7 = vld [vmem:[#allocation5 + $0x88] sm:$0xff]   ;;  %v997_v10 = vld [vmem:[#allocation5 + $0x10] sm:$0xff]   ;;  %v180_v29 = vunpack.c.0.s8 %v179_v23  ;;  %s1100_s17 = scalar_lea.vmem %s817_s16, 32  ;;  %p1105_p3 = scmp.lt.s32.totalorder %s817_s16, %s817_s16 }
  0x2a   :  { %916 = vmatpush3.bf16.msra.mxu1 %v990_v3  ;;  %895 = vmatprep.subr.bf16.mxu0 %v991_v4  ;;  %v998_v11 = vld [vmem:[#allocation5 + $0x90] sm:$0xff]   ;;  %v999_v12 = vld [vmem:[#allocation5 + $0x58] sm:$0xff]   ;;  %v1003_v16 = vld [vmem:[#allocation5 + $0x60] sm:$0xff]   ;;  %p1101_p2 = scmp.ne.s32.totalorder %s817_s16, %s1100_s17  ;;  %p1106_p4 = scmp.lt.s32.totalorder %s1100_s17, %s1100_s17 }
  0x2b   :  { %917 = vmatprep.subr.bf16.mxu1 %v992_v5  ;;  %v1000_v13 = vld [vmem:[#allocation5 + $0xd8] sm:$0xff]   ;;  %v1004_v17 = vld [vmem:[#allocation5 + $0xe0] sm:$0xff]   ;;  %v1007_v20 = vld [vmem:[#allocation5 + $0x68] sm:$0xff]   ;;  %v1185_v35 = vsub.s32 %v180_v29, %v182_v30 }
  0x2c   :  { %v1001_v14 = vld [vmem:[#allocation5 + $0x18] sm:$0xff]   ;;  %v1005_v18 = vld [vmem:[#allocation5 + $0x20] sm:$0xff]   ;;  %v1008_v21 = vld [vmem:[#allocation5 + $0xe8] sm:$0xff]   ;;  %p1107_p5 = por %p1106_p4, %p1105_p3 }
  0x2d   :  { %896 = vmatpush3.bf16.msra.mxu0 %v993_v6  ;;  %v1002_v15 = vld [vmem:[#allocation5 + $0x98] sm:$0xff]   ;;  %v1006_v19 = vld [vmem:[#allocation5 + $0xa0] sm:$0xff]   ;;  %v1009_v25 = vld [vmem:[#allocation5 + $0x28] sm:$0xff]  }
  0x2e   :  { %918 = vmatpush3.bf16.msra.mxu1 %v994_v7  ;;  %897 = vmatprep.subr.bf16.mxu0 %v995_v8  ;;  %v1010_v26 = vld [vmem:[#allocation5 + $0xa8] sm:$0xff]   ;;  %v1011_v27 = vld [vmem:[#allocation5 + $0x70] sm:$0xff]   ;;  %v1015_v33 = vld [vmem:[#allocation5 + $0x78] sm:$0xff]   ;;  %p1108_p6 = pnand %p1107_p5, %p1101_p2 }
  0x2f   :  { %919 = vmatprep.subr.bf16.mxu1 %v996_v9  ;;  %v1012_v28 = vld [vmem:[#allocation5 + $0xf0] sm:$0xff]   ;;  %v1016_v34 = vld [vmem:[#allocation5 + $0xf8] sm:$0xff]   ;;  %v1020_v41 = vld [vmem:[#allocation5 + $0x140] sm:$0xff]  }
  0x30   :  { %v1013_v31 = vld [vmem:[#allocation5 + $0x30] sm:$0xff]   ;;  %v1017_v36 = vld [vmem:[#allocation5 + $0x38] sm:$0xff]   ;;  %v1021_v42 = vld [vmem:[#allocation5 + $0x1c0] sm:$0xff]  }
  0x31   :  { %898 = vmatpush3.bf16.msra.mxu0 %v997_v10  ;;  %v1014_v32 = vld [vmem:[#allocation5 + $0xb0] sm:$0xff]   ;;  %v1018_v37 = vld [vmem:[#allocation5 + $0xb8] sm:$0xff]   ;;  %v1022_v47 = vld [vmem:[#allocation5 + $0x100] sm:$0xff]  }
  0x32   :  { %920 = vmatpush3.bf16.msra.mxu1 %v998_v11  ;;  %899 = vmatprep.subr.bf16.mxu0 %v999_v12  ;;  %v42_v38 = vld [vmem:[#allocation2] sm:$0xff]  ;;  %v1024_v50 = vld [vmem:[#allocation5 + $0x148] sm:$0xff]   ;;  %v1023_v52 = vld [vmem:[#allocation5 + $0x180] sm:$0xff]  }
  0x33   :  { %921 = vmatprep.subr.bf16.mxu1 %v1000_v13  ;;  %v177_v39 = vcombine.high %v42_v38, %v42_v38  ;;  %v184_v40 = vrot.slane %v42_v38, %v1185_v35  ;;  %v1025_v54 = vld [vmem:[#allocation5 + $0x1c8] sm:$0xff]   ;;  %v1028_v57 = vld [vmem:[#allocation5 + $0x150] sm:$0xff]   ;;  %v1032_v61 = vld [vmem:[#allocation5 + $0x158] sm:$0xff]  }
  0x34   :  { %v1026_v55 = vld [vmem:[#allocation5 + $0x108] sm:$0xff]   ;;  %v1029_v59 = vld [vmem:[#allocation5 + $0x1d0] sm:$0xff]   ;;  %v1033_v63 = vld [vmem:[#allocation5 + $0x1d8] sm:$0xff]  }
  0x35   :  { %900 = vmatpush3.bf16.msra.mxu0 %v1001_v14  ;;  %v192_v43 = vcombine.high %v184_v40, %v184_v40  ;;  %v200_v44 = vrot.slane %v184_v40, %v1185_v35  ;;  %v1190_v45 = vrot.slane %v177_v39, %v1185_v35  ;;  %v1027_v58 = vld [vmem:[#allocation5 + $0x188] sm:$0xff]   ;;  %v1030_v60 = vld [vmem:[#allocation5 + $0x110] sm:$0xff]   ;;  %v1034_v0 = vld [vmem:[#allocation5 + $0x118] sm:$0xff]  }
  0x36   :  { %922 = vmatpush3.bf16.msra.mxu1 %v1002_v15  ;;  %901 = vmatprep.subr.bf16.mxu0 %v1003_v16  ;;  %v1031_v62 = vld [vmem:[#allocation5 + $0x190] sm:$0xff]   ;;  %v1036_v1 = vld [vmem:[#allocation5 + $0x160] sm:$0xff]   ;;  %v1035_v2 = vld [vmem:[#allocation5 + $0x198] sm:$0xff]  }
  0x37   :  { %923 = vmatprep.subr.bf16.mxu1 %v1004_v17  ;;  %v214_v46 = vrot.slane %v192_v43, %v1185_v35  ;;  %v193_v48 = vcombine.high %v1190_v45, %v1190_v45  ;;  %v222_v49 = vcombine.high %v200_v44, %v200_v44  ;;  %v1037_v3 = vld [vmem:[#allocation5 + $0x1e0] sm:$0xff]   ;;  %v1040_v5 = vld [vmem:[#allocation5 + $0x168] sm:$0xff]   ;;  %v1044_v9 = vld [vmem:[#allocation5 + $0x170] sm:$0xff]   ;;  %v207_v17 = vrot.slane %v1190_v45, %v1185_v35 }
  0x38   :  { %v1038_v4 = vld [vmem:[#allocation5 + $0x120] sm:$0xff]   ;;  %v1041_v7 = vld [vmem:[#allocation5 + $0x1e8] sm:$0xff]   ;;  %v1045_v11 = vld [vmem:[#allocation5 + $0x1f0] sm:$0xff]  }
  0x39   :  { %902 = vmatpush3.bf16.msra.mxu0 %v1005_v18  ;;  %650 = vmatprep.mubr.bf16.mxu0 %v214_v46  ;;  %v224_v51 = vcombine.high %v214_v46, %v214_v46  ;;  %v221_v53 = vrot.slane %v193_v48, %v1185_v35  ;;  %v1039_v6 = vld [vmem:[#allocation5 + $0x1a0] sm:$0xff]   ;;  %v1042_v8 = vld [vmem:[#allocation5 + $0x128] sm:$0xff]   ;;  %v1046_v12 = vld [vmem:[#allocation5 + $0x130] sm:$0xff]  }
  0x3a   :  { %924 = vmatpush3.bf16.msra.mxu1 %v1006_v19  ;;  %903 = vmatprep.subr.bf16.mxu0 %v1007_v20  ;;  %v1043_v10 = vld [vmem:[#allocation5 + $0x1a8] sm:$0xff]   ;;  %v1048_v13 = vld [vmem:[#allocation5 + $0x178] sm:$0xff]   ;;  %v1047_v14 = vld [vmem:[#allocation5 + $0x1b0] sm:$0xff]   ;;  %v223_v19 = vcombine.high %v207_v17, %v207_v17 }
  0x3b   :  { %925 = vmatprep.subr.bf16.mxu1 %v1008_v21  ;;  %690 = vmatprep.mubr.bf16.mxu1 %v224_v51  ;;  %v225_v56 = vcombine.high %v221_v53, %v221_v53  ;;  %v1049_v15 = vld [vmem:[#allocation5 + $0x1f8] sm:$0xff]  }
  0x3c   :  { %v1050_v16 = vld [vmem:[#allocation5 + $0x138] sm:$0xff]  }
  0x3d   :  { %904 = vmatpush3.bf16.msra.mxu0 %v1009_v25  ;;  %v1051_v18 = vld [vmem:[#allocation5 + $0x1b8] sm:$0xff]  }
  0x3e   :  { %926 = vmatpush3.bf16.msra.mxu1 %v1010_v26  ;;  %905 = vmatprep.subr.bf16.mxu0 %v1011_v27  ;;  %v826_v21 = vld [vmem:[%s1221_s2] ss:$0 sm:$0xff] }
  0x3f   :  { %927 = vmatprep.subr.bf16.mxu1 %v1012_v28 }
  0x41   :  { %906 = vmatpush3.bf16.msra.mxu0 %v1013_v31 }
  0x42   :  { %928 = vmatpush3.bf16.msra.mxu1 %v1014_v32  ;;  %907 = vmatprep.subr.bf16.mxu0 %v1015_v33 }
  0x43   :  { %929 = vmatprep.subr.bf16.mxu1 %v1016_v34 }
  0x45   :  { %908 = vmatpush3.bf16.msra.mxu0 %v1017_v36 }
  0x46   :  { %930 = vmatpush3.bf16.msra.mxu1 %v1018_v37  ;;  %937 = vmatprep.subr.bf16.mxu0 %v1020_v41 }
  0x47   :  { %959 = vmatprep.subr.bf16.mxu1 %v1021_v42 }
  0x48   :  { %651 = vmatmul.mubr.bf16.vlgmr.msra.gmra.mrb[0].mxu0 %v200_v44 }
  0x49   :  { %938 = vmatpush3.bf16.msra.mxu0 %v1022_v47  ;;  %691 = vmatmul.mubr.bf16.vlgmr.msra.gmra.mrb[0].mxu1 %v222_v49 }
  0x4a   :  { %939 = vmatprep.subr.bf16.mxu0 %v1024_v50  ;;  %960 = vmatpush3.bf16.msra.mxu1 %v1023_v52 }
  0x4b   :  { %730 = vmatprep.mubr.bf16.mxu0 %v221_v53  ;;  %961 = vmatprep.subr.bf16.mxu1 %v1025_v54 }
  0x4c   :  { %770 = vmatprep.mubr.bf16.mxu1 %v225_v56 }
  0x4d   :  { %940 = vmatpush3.bf16.msra.mxu0 %v1026_v55 }
  0x4e   :  { %941 = vmatprep.subr.bf16.mxu0 %v1028_v57  ;;  %962 = vmatpush3.bf16.msra.mxu1 %v1027_v58  ;;  %v891_v58 = vld [vmem:[%s1221_s2 + $0x1] ss:$0 sm:$0xff] }
  0x4f   :  { %963 = vmatprep.subr.bf16.mxu1 %v1029_v59 }
  0x51   :  { %942 = vmatpush3.bf16.msra.mxu0 %v1030_v60  ;;  %v892_v60 = vld [vmem:[%s1221_s2 + $0x2] ss:$0 sm:$0xff] }
  0x52   :  { %943 = vmatprep.subr.bf16.mxu0 %v1032_v61  ;;  %964 = vmatpush3.bf16.msra.mxu1 %v1031_v62 }
  0x53   :  { %965 = vmatprep.subr.bf16.mxu1 %v1033_v63 }
  0x55   :  { %944 = vmatpush3.bf16.msra.mxu0 %v1034_v0 }
  0x56   :  { %945 = vmatprep.subr.bf16.mxu0 %v1036_v1  ;;  %966 = vmatpush3.bf16.msra.mxu1 %v1035_v2 }
  0x57   :  { %967 = vmatprep.subr.bf16.mxu1 %v1037_v3 }
  0x59   :  { %946 = vmatpush3.bf16.msra.mxu0 %v1038_v4 }
  0x5a   :  { %947 = vmatprep.subr.bf16.mxu0 %v1040_v5  ;;  %968 = vmatpush3.bf16.msra.mxu1 %v1039_v6 }
  0x5b   :  { %969 = vmatprep.subr.bf16.mxu1 %v1041_v7 }
  0x5d   :  { %948 = vmatpush3.bf16.msra.mxu0 %v1042_v8 }
  0x5e   :  { %949 = vmatprep.subr.bf16.mxu0 %v1044_v9  ;;  %970 = vmatpush3.bf16.msra.mxu1 %v1043_v10 }
  0x5f   :  { %971 = vmatprep.subr.bf16.mxu1 %v1045_v11 }
  0x61   :  { %950 = vmatpush3.bf16.msra.mxu0 %v1046_v12 }
  0x62   :  { %951 = vmatprep.subr.bf16.mxu0 %v1048_v13  ;;  %972 = vmatpush3.bf16.msra.mxu1 %v1047_v14 }
  0x63   :  { %973 = vmatprep.subr.bf16.mxu1 %v1049_v15 }
  0x65   :  { %952 = vmatpush3.bf16.msra.mxu0 %v1050_v16 }
  0x66   :  { %974 = vmatpush3.bf16.msra.mxu1 %v1051_v18 }
  0x68   :  { %731 = vmatmul.mubr.bf16.vlgmr.msra.gmra.mrb[4].mxu0 %v207_v17 }
  0x69   :  { %771 = vmatmul.mubr.bf16.vlgmr.msra.gmra.mrb[4].mxu1 %v223_v19 }
 0x11b   :  { %v909_v20 = vpop.f32.mrb[0].mxu0 }
 0x11c   :  { %v910_v22 = vpop.f32.mrb[1].mxu0  ;;  %v931_v23 = vpop.f32.mrb[0].mxu1 }
 0x11d   :  { %v911_v24 = vadd.f32 %v910_v22, %v909_v20  ;;  %v912_v25 = vpop.f32.mrb[2].mxu0  ;;  %v932_v26 = vpop.f32.mrb[1].mxu1 }
 0x11e   :  { %v913_v27 = vpop.f32.mrb[3].mxu0  ;;  %v933_v29 = vadd.f32 %v932_v26, %v931_v23  ;;  %v934_v30 = vpop.f32.mrb[2].mxu1 }
 0x11f   :  { %v653_v28 = vadd.f32 %v911_v24, %v826_v21  ;;  %v935_v31 = vpop.f32.mrb[3].mxu1 }
 0x121   :  { %v693_v32 = vadd.f32 %v933_v29, %v653_v28 }
 0x13b   :  { %v953_v33 = vpop.f32.mrb[4].mxu0 }
 0x13c   :  { %v954_v34 = vpop.f32.mrb[5].mxu0  ;;  %v975_v35 = vpop.f32.mrb[4].mxu1 }
 0x13d   :  { %v955_v36 = vadd.f32 %v954_v34, %v953_v33  ;;  %v956_v37 = vpop.f32.mrb[6].mxu0  ;;  %v976_v38 = vpop.f32.mrb[5].mxu1 }
 0x13e   :  { %v957_v39 = vpop.f32.mrb[7].mxu0  ;;  %v977_v41 = vadd.f32 %v976_v38, %v975_v35  ;;  %v978_v42 = vpop.f32.mrb[6].mxu1 }
 0x13f   :  { %v733_v40 = vadd.f32 %v955_v36, %v693_v32  ;;  %v979_v43 = vpop.f32.mrb[7].mxu1 }
 0x141   :  { %v773_v44 = vadd.f32 %v977_v41, %v733_v40 }
 0x143   :  { %v779_v45 = vsel %vm778_vm0, %v773_v44, 0.0  ;;  %v784_v46 = vmul.f32 %v773_v44, %v773_v44 }
 0x144   :  { %780 = vadd.xlane.f32.xlu0 %v779_v45 }
 0x145   :  { %v785_v47 = vsel %vm778_vm0, %v784_v46, 0.0 }
 0x148   :  { %786 = vadd.xlane.f32.xlu0 %v785_v47 }
 0x1d1   :  { %v781_v48 = vpop.xlane.xlu0 %780 }
 0x1d2   :  { %v783_v49 = vmul.f32 0.0078125, %v781_v48 }
 0x1d4   :  { %v789_v51 = vmul.f32 %v783_v49, %v783_v49  ;;  %v792_v56 = vsub.f32 %v773_v44, %v783_v49 }
 0x1d5   :  { %v787_v50 = vpop.xlane.xlu0 %786 }
 0x1d6   :  { %v788_v52 = vmul.f32 0.0078125, %v787_v50 }
 0x1d8   :  { %v790_v53 = vsub.f32 %v788_v52, %v789_v51 }
 0x1da   :  { %v791_v54 = vmax.f32 %v790_v53, 0.0 }
 0x1dc   :  { %v793_v55 = vadd.f32 1e-05, %v791_v54 }
 0x1de   :  { %1052 = vrsqrt.f32 %v793_v55 }
 0x1e8   :  { %v1053_v57 = vpop.eup %1052 }
 0x1e9   :  { %v795_v59 = vmul.f32 %v1053_v57, %v792_v56 }
 0x1eb   :  { %v801_v61 = vmul.f32 %v891_v58, %v795_v59 }
 0x1ed   :  { %v807_v62 = vadd.f32 %v892_v60, %v801_v61 }
 0x1ef   :  { %1054 = vtanh.f32 %v807_v62 }
 0x1f9   :  { %v1055_v63 = vpop.eup %1054 }
 0x1fa   :  { %809 = vst [vmem:[#allocation7] sm:$0x3] %v1055_v63 }
 0x1fb   :  { %1111 = shalt.err (!%p1108_p6)
}
 0x1fc   :  { %s1112_s20 = scalar_lea.hbm %s1222_s3, 32 }
 0x1fd   :  { %p1113_p7 = scmp.ne.s32.totalorder %s1222_s3, %s1112_s20  ;;  %p1116_p8 = scmp.lt.u32.totalorder %s1112_s20, %s1222_s3 }
 0x1ff   :  { %p1118_p9 = pnand %p1116_p8, %p1113_p7 }
 0x201   :  { %1121 = shalt.err (!%p1118_p9)
}
 0x202   :  { %819 = dma.vmem_to_hbm [thread:$0]  %s817_s16, 32, %s1222_s3, [#allocation4]  }
 0x203   :  { %1126 = dma.done.wait [#allocation4], 32  }
 0x204   :  { %1127 = vsyncadd [#allocation4], 4294967264 }
 0x205   :  { %823 = vsyncpa [#allocation3], 1 }
 0x206   :  { %824 = vsyncpa [#allocation6], 1 }
 0x207   :  { %825 = vsyncpa [#allocation4], 1 }

</bundles_post_ra>
